<compile_context>
chip_gen: v7x
topology: tpu7x:2x2x1
jax: 0.10.0
libtpu: 0.0.40
codegen_flags: <defaults>
</compile_context>

<pallas_src>
import functools

import jax
import jax.numpy as jnp
from jax import lax
from jax.experimental import pallas as pl
from jax.experimental.pallas import tpu as pltpu


def _glove_kernel(ids_a_ref, w_a_ref, ids_b_ref, w_b_ref, emb_ref, out_ref,
                  *, tb, v_pad, n_a, n_b):
    """One grid step = tb batch rows.

    ids_a_ref : VMEM (tb, 2L) int32   word ids of expr1 then expr0
    w_a_ref   : VMEM (tb, 2L) float32 weights +1/cnt1 then -1/cnt0 (0 on padding)
    ids_b_ref : VMEM (tb, L)  int32   word ids of expr2
    w_b_ref   : VMEM (tb, L)  float32 weights 1/cnt2 (0 on padding)
    emb_ref   : VMEM (V_pad, D_pad) float32  full table, resident
    out_ref   : VMEM (tb, D_pad) float32
    """
    col = lax.broadcasted_iota(jnp.int32, (tb, v_pad), 1)

    def build_coef(ids_blk, w_blk, n_slots):
        coef = jnp.zeros((tb, v_pad), jnp.float32)
        for l in range(n_slots):                       # small static unroll
            hit = ids_blk[:, l:l + 1] == col           # (tb, V_pad)
            coef = coef + jnp.where(hit, w_blk[:, l:l + 1], 0.0)
        return coef

    ids_a = ids_a_ref[...]
    w_a = w_a_ref[...]
    ids_b = ids_b_ref[...]
    w_b = w_b_ref[...]

    coef_a = build_coef(ids_a, w_a, n_a)               # encodes (e1 - e0)
    coef_b = build_coef(ids_b, w_b, n_b)               # encodes e2

    emb = emb_ref[...]
    diff = jnp.dot(coef_a, emb, preferred_element_type=jnp.float32)  # (tb, D_pad)
    e2 = jnp.dot(coef_b, emb, preferred_element_type=jnp.float32)    # (tb, D_pad)

    out_ref[...] = jnp.abs(diff) + e2


def glove_no_training_forward(ids, counts, emb, *, tb=256):
    """ids: int32 (B, 3, L); counts: int32 (B, 3), counts >= 1; emb: f32 (V, D)."""
    B, n_expr, L = ids.shape
    assert n_expr == 3
    V, D = emb.shape

    # Lane-dense padding of the embedding table (both axes to multiples of 128).
    d_pad = ((D + 127) // 128) * 128
    v_pad = ((V + 127) // 128) * 128
    emb_p = jnp.pad(emb.astype(jnp.float32), ((0, v_pad - V), (0, d_pad - D)))

    # Batch tile: multiple of 8, no larger than the padded batch, capped at tb.
    tb_eff = min(((tb + 7) // 8) * 8, ((B + 7) // 8) * 8)
    tb_eff = max(tb_eff, 8)
    b_pad = ((B + tb_eff - 1) // tb_eff) * tb_eff

    # Per-word weights with 1/count and the padding mask baked in.
    pos = jnp.arange(L, dtype=jnp.int32)[None, None, :]
    mask = (pos < counts[:, :, None]).astype(jnp.float32)            # (B, 3, L)
    inv = 1.0 / jnp.maximum(counts, 1).astype(jnp.float32)           # (B, 3)
    w = mask * inv[:, :, None]                                       # (B, 3, L)

    # Fold the +-1 of (e1 - e0) into the weights of the "A" slots.
    ids_a = jnp.concatenate([ids[:, 1, :], ids[:, 0, :]], axis=1).astype(jnp.int32)
    w_a = jnp.concatenate([w[:, 1, :], -w[:, 0, :]], axis=1)
    ids_b = ids[:, 2, :].astype(jnp.int32)
    w_b = w[:, 2, :]

    pad_b = b_pad - B
    ids_a = jnp.pad(ids_a, ((0, pad_b), (0, 0)))
    w_a = jnp.pad(w_a, ((0, pad_b), (0, 0)))
    ids_b = jnp.pad(ids_b, ((0, pad_b), (0, 0)))
    w_b = jnp.pad(w_b, ((0, pad_b), (0, 0)))

    kernel = functools.partial(_glove_kernel, tb=tb_eff, v_pad=v_pad,
                               n_a=2 * L, n_b=L)

    out = pl.pallas_call(
        kernel,
        out_shape=jax.ShapeDtypeStruct((b_pad, d_pad), jnp.float32),
        grid_spec=pltpu.PrefetchScalarGridSpec(
            num_scalar_prefetch=0,
            grid=(b_pad // tb_eff,),
            in_specs=[
                pl.BlockSpec((tb_eff, 2 * L), lambda i: (i, 0)),
                pl.BlockSpec((tb_eff, 2 * L), lambda i: (i, 0)),
                pl.BlockSpec((tb_eff, L), lambda i: (i, 0)),
                pl.BlockSpec((tb_eff, L), lambda i: (i, 0)),
                # Full embedding table, resident in VMEM, no block pipelining.
                pl.BlockSpec(memory_space=pltpu.MemorySpace.VMEM),
            ],
            out_specs=pl.BlockSpec((tb_eff, d_pad), lambda i: (i, 0)),
        ),
        compiler_params=pltpu.CompilerParams(
            dimension_semantics=("parallel",),
        ),
    )(ids_a, w_a, ids_b, w_b, emb_p)

    return out[:B, :D]


def glove_reference(ids, counts, emb):
    """Pure-JAX reference mirroring the PyTorch forward."""
    B, E, L = ids.shape
    gathered = emb[ids]                                              # (B, 3, L, D)
    mask = (jnp.arange(L)[None, None, :] < counts[:, :, None])       # (B, 3, L)
    summed = (gathered * mask[..., None].astype(jnp.float32)).sum(axis=2)
    mean = summed / counts[..., None].astype(jnp.float32)            # (B, 3, D)
    e0, e1, e2 = mean[:, 0], mean[:, 1], mean[:, 2]
    return jnp.abs(e1 - e0) + e2                                     # (B, D)


if __name__ == "__main__":
    def run_case(B, L, V, D, tb, key):
        k_emb, k_ids, k_cnt = jax.random.split(key, 3)
        emb = jax.random.normal(k_emb, (V, D), dtype=jnp.float32)
        # Match module init convention: row 0 = UNK (zeros), row 1 = PAD (ones).
        emb = emb.at[0].set(0.0).at[1].set(1.0)
        ids = jax.random.randint(k_ids, (B, 3, L), 0, V, dtype=jnp.int32)
        counts = jax.random.randint(k_cnt, (B, 3), 1, L + 1, dtype=jnp.int32)

        out = glove_no_training_forward(ids, counts, emb, tb=tb)
        out = jax.block_until_ready(out)

        ref = glove_reference(ids, counts, emb)
        assert out.shape == (B, D)
        assert jnp.allclose(out, ref, atol=1e-4, rtol=1e-4), "mismatch vs reference"

    key = jax.random.PRNGKey(0)
    k1, k2 = jax.random.split(key)
    # Small single-tile case (module-consistent shapes).
    run_case(B=4, L=8, V=64, D=300, tb=256, key=k1)
    # Multi-tile case exercising padding on batch / vocab / D and grid > 1.
    run_case(B=200, L=12, V=100, D=300, tb=64, key=k2)

    print("KERNEL_OK")
</pallas_src>

<mosaic_0001>
module attributes {stable_mosaic.version = 11 : i64} {
  func.func @_glove_kernel(%arg0: i32, %arg1: memref<8x16xi32, #tpu.memory_space<vmem>>, %arg2: memref<8x16xf32, #tpu.memory_space<vmem>>, %arg3: memref<8x8xi32, #tpu.memory_space<vmem>>, %arg4: memref<8x8xf32, #tpu.memory_space<vmem>>, %arg5: memref<128x384xf32, #tpu.memory_space<vmem>>, %arg6: memref<8x384xf32, #tpu.memory_space<vmem>>) attributes {dimension_semantics = [#tpu.dimension_semantics<parallel>], iteration_bounds = array<i64: 1>, scalar_prefetch = 0 : i64, scratch_operands = 0 : i64, tpu.core_type = #tpu.core_type<tc>, window_params = [{transform_indices = @transform_0, window_bounds = array<i64: 8, 16>}, {transform_indices = @transform_1, window_bounds = array<i64: 8, 16>}, {transform_indices = @transform_2, window_bounds = array<i64: 8, 8>}, {transform_indices = @transform_3, window_bounds = array<i64: 8, 8>}, {pipeline_mode = #tpu.pipeline_mode<synchronous>, transform_indices = @transform_4, window_bounds = array<i64: 128, 384>}, {transform_indices = @transform_5, window_bounds = array<i64: 8, 384>}]} {
    %0 = tpu.iota {dimensions = array<i32: 1>} : vector<8x128xi32>
    %c0 = arith.constant 0 : index
    %c0_0 = arith.constant 0 : index
    %1 = vector.load %arg1[%c0, %c0_0] : memref<8x16xi32, #tpu.memory_space<vmem>>, vector<8x16xi32>
    %c0_1 = arith.constant 0 : index
    %c0_2 = arith.constant 0 : index
    %2 = vector.load %arg2[%c0_1, %c0_2] : memref<8x16xf32, #tpu.memory_space<vmem>>, vector<8x16xf32>
    %c0_3 = arith.constant 0 : index
    %c0_4 = arith.constant 0 : index
    %3 = vector.load %arg3[%c0_3, %c0_4] : memref<8x8xi32, #tpu.memory_space<vmem>>, vector<8x8xi32>
    %c0_5 = arith.constant 0 : index
    %c0_6 = arith.constant 0 : index
    %4 = vector.load %arg4[%c0_5, %c0_6] : memref<8x8xf32, #tpu.memory_space<vmem>>, vector<8x8xf32>
    %cst = arith.constant 0.000000e+00 : f32
    %5 = vector.broadcast %cst : f32 to vector<8x128xf32>
    %6 = vector.extract_strided_slice %1 {offsets = [0, 0], sizes = [8, 1], strides = [1, 1]} : vector<8x16xi32> to vector<8x1xi32>
    %7 = vector.broadcast %6 : vector<8x1xi32> to vector<8x128xi32>
    %8 = arith.cmpi eq, %7, %0 : vector<8x128xi32>
    %9 = vector.extract_strided_slice %2 {offsets = [0, 0], sizes = [8, 1], strides = [1, 1]} : vector<8x16xf32> to vector<8x1xf32>
    %cst_7 = arith.constant 0.000000e+00 : f32
    %10 = vector.shape_cast %9 : vector<8x1xf32> to vector<8x1xf32>
    %11 = vector.broadcast %10 : vector<8x1xf32> to vector<8x128xf32>
    %12 = vector.broadcast %cst_7 : f32 to vector<8x128xf32>
    %13 = arith.select %8, %11, %12 : vector<8x128xi1>, vector<8x128xf32>
    %14 = arith.addf %5, %13 : vector<8x128xf32>
    %15 = vector.extract_strided_slice %1 {offsets = [0, 1], sizes = [8, 1], strides = [1, 1]} : vector<8x16xi32> to vector<8x1xi32>
    %16 = vector.broadcast %15 : vector<8x1xi32> to vector<8x128xi32>
    %17 = arith.cmpi eq, %16, %0 : vector<8x128xi32>
    %18 = vector.extract_strided_slice %2 {offsets = [0, 1], sizes = [8, 1], strides = [1, 1]} : vector<8x16xf32> to vector<8x1xf32>
    %cst_8 = arith.constant 0.000000e+00 : f32
    %19 = vector.shape_cast %18 : vector<8x1xf32> to vector<8x1xf32>
    %20 = vector.broadcast %19 : vector<8x1xf32> to vector<8x128xf32>
    %21 = vector.broadcast %cst_8 : f32 to vector<8x128xf32>
    %22 = arith.select %17, %20, %21 : vector<8x128xi1>, vector<8x128xf32>
    %23 = arith.addf %14, %22 : vector<8x128xf32>
    %24 = vector.extract_strided_slice %1 {offsets = [0, 2], sizes = [8, 1], strides = [1, 1]} : vector<8x16xi32> to vector<8x1xi32>
    %25 = vector.broadcast %24 : vector<8x1xi32> to vector<8x128xi32>
    %26 = arith.cmpi eq, %25, %0 : vector<8x128xi32>
    %27 = vector.extract_strided_slice %2 {offsets = [0, 2], sizes = [8, 1], strides = [1, 1]} : vector<8x16xf32> to vector<8x1xf32>
    %cst_9 = arith.constant 0.000000e+00 : f32
    %28 = vector.shape_cast %27 : vector<8x1xf32> to vector<8x1xf32>
    %29 = vector.broadcast %28 : vector<8x1xf32> to vector<8x128xf32>
    %30 = vector.broadcast %cst_9 : f32 to vector<8x128xf32>
    %31 = arith.select %26, %29, %30 : vector<8x128xi1>, vector<8x128xf32>
    %32 = arith.addf %23, %31 : vector<8x128xf32>
    %33 = vector.extract_strided_slice %1 {offsets = [0, 3], sizes = [8, 1], strides = [1, 1]} : vector<8x16xi32> to vector<8x1xi32>
    %34 = vector.broadcast %33 : vector<8x1xi32> to vector<8x128xi32>
    %35 = arith.cmpi eq, %34, %0 : vector<8x128xi32>
    %36 = vector.extract_strided_slice %2 {offsets = [0, 3], sizes = [8, 1], strides = [1, 1]} : vector<8x16xf32> to vector<8x1xf32>
    %cst_10 = arith.constant 0.000000e+00 : f32
    %37 = vector.shape_cast %36 : vector<8x1xf32> to vector<8x1xf32>
    %38 = vector.broadcast %37 : vector<8x1xf32> to vector<8x128xf32>
    %39 = vector.broadcast %cst_10 : f32 to vector<8x128xf32>
    %40 = arith.select %35, %38, %39 : vector<8x128xi1>, vector<8x128xf32>
    %41 = arith.addf %32, %40 : vector<8x128xf32>
    %42 = vector.extract_strided_slice %1 {offsets = [0, 4], sizes = [8, 1], strides = [1, 1]} : vector<8x16xi32> to vector<8x1xi32>
    %43 = vector.broadcast %42 : vector<8x1xi32> to vector<8x128xi32>
    %44 = arith.cmpi eq, %43, %0 : vector<8x128xi32>
    %45 = vector.extract_strided_slice %2 {offsets = [0, 4], sizes = [8, 1], strides = [1, 1]} : vector<8x16xf32> to vector<8x1xf32>
    %cst_11 = arith.constant 0.000000e+00 : f32
    %46 = vector.shape_cast %45 : vector<8x1xf32> to vector<8x1xf32>
    %47 = vector.broadcast %46 : vector<8x1xf32> to vector<8x128xf32>
    %48 = vector.broadcast %cst_11 : f32 to vector<8x128xf32>
    %49 = arith.select %44, %47, %48 : vector<8x128xi1>, vector<8x128xf32>
    %50 = arith.addf %41, %49 : vector<8x128xf32>
    %51 = vector.extract_strided_slice %1 {offsets = [0, 5], sizes = [8, 1], strides = [1, 1]} : vector<8x16xi32> to vector<8x1xi32>
    %52 = vector.broadcast %51 : vector<8x1xi32> to vector<8x128xi32>
    %53 = arith.cmpi eq, %52, %0 : vector<8x128xi32>
    %54 = vector.extract_strided_slice %2 {offsets = [0, 5], sizes = [8, 1], strides = [1, 1]} : vector<8x16xf32> to vector<8x1xf32>
    %cst_12 = arith.constant 0.000000e+00 : f32
    %55 = vector.shape_cast %54 : vector<8x1xf32> to vector<8x1xf32>
    %56 = vector.broadcast %55 : vector<8x1xf32> to vector<8x128xf32>
    %57 = vector.broadcast %cst_12 : f32 to vector<8x128xf32>
    %58 = arith.select %53, %56, %57 : vector<8x128xi1>, vector<8x128xf32>
    %59 = arith.addf %50, %58 : vector<8x128xf32>
    %60 = vector.extract_strided_slice %1 {offsets = [0, 6], sizes = [8, 1], strides = [1, 1]} : vector<8x16xi32> to vector<8x1xi32>
    %61 = vector.broadcast %60 : vector<8x1xi32> to vector<8x128xi32>
    %62 = arith.cmpi eq, %61, %0 : vector<8x128xi32>
    %63 = vector.extract_strided_slice %2 {offsets = [0, 6], sizes = [8, 1], strides = [1, 1]} : vector<8x16xf32> to vector<8x1xf32>
    %cst_13 = arith.constant 0.000000e+00 : f32
    %64 = vector.shape_cast %63 : vector<8x1xf32> to vector<8x1xf32>
    %65 = vector.broadcast %64 : vector<8x1xf32> to vector<8x128xf32>
    %66 = vector.broadcast %cst_13 : f32 to vector<8x128xf32>
    %67 = arith.select %62, %65, %66 : vector<8x128xi1>, vector<8x128xf32>
    %68 = arith.addf %59, %67 : vector<8x128xf32>
    %69 = vector.extract_strided_slice %1 {offsets = [0, 7], sizes = [8, 1], strides = [1, 1]} : vector<8x16xi32> to vector<8x1xi32>
    %70 = vector.broadcast %69 : vector<8x1xi32> to vector<8x128xi32>
    %71 = arith.cmpi eq, %70, %0 : vector<8x128xi32>
    %72 = vector.extract_strided_slice %2 {offsets = [0, 7], sizes = [8, 1], strides = [1, 1]} : vector<8x16xf32> to vector<8x1xf32>
    %cst_14 = arith.constant 0.000000e+00 : f32
    %73 = vector.shape_cast %72 : vector<8x1xf32> to vector<8x1xf32>
    %74 = vector.broadcast %73 : vector<8x1xf32> to vector<8x128xf32>
    %75 = vector.broadcast %cst_14 : f32 to vector<8x128xf32>
    %76 = arith.select %71, %74, %75 : vector<8x128xi1>, vector<8x128xf32>
    %77 = arith.addf %68, %76 : vector<8x128xf32>
    %78 = vector.extract_strided_slice %1 {offsets = [0, 8], sizes = [8, 1], strides = [1, 1]} : vector<8x16xi32> to vector<8x1xi32>
    %79 = vector.broadcast %78 : vector<8x1xi32> to vector<8x128xi32>
    %80 = arith.cmpi eq, %79, %0 : vector<8x128xi32>
    %81 = vector.extract_strided_slice %2 {offsets = [0, 8], sizes = [8, 1], strides = [1, 1]} : vector<8x16xf32> to vector<8x1xf32>
    %cst_15 = arith.constant 0.000000e+00 : f32
    %82 = vector.shape_cast %81 : vector<8x1xf32> to vector<8x1xf32>
    %83 = vector.broadcast %82 : vector<8x1xf32> to vector<8x128xf32>
    %84 = vector.broadcast %cst_15 : f32 to vector<8x128xf32>
    %85 = arith.select %80, %83, %84 : vector<8x128xi1>, vector<8x128xf32>
    %86 = arith.addf %77, %85 : vector<8x128xf32>
    %87 = vector.extract_strided_slice %1 {offsets = [0, 9], sizes = [8, 1], strides = [1, 1]} : vector<8x16xi32> to vector<8x1xi32>
    %88 = vector.broadcast %87 : vector<8x1xi32> to vector<8x128xi32>
    %89 = arith.cmpi eq, %88, %0 : vector<8x128xi32>
    %90 = vector.extract_strided_slice %2 {offsets = [0, 9], sizes = [8, 1], strides = [1, 1]} : vector<8x16xf32> to vector<8x1xf32>
    %cst_16 = arith.constant 0.000000e+00 : f32
    %91 = vector.shape_cast %90 : vector<8x1xf32> to vector<8x1xf32>
    %92 = vector.broadcast %91 : vector<8x1xf32> to vector<8x128xf32>
    %93 = vector.broadcast %cst_16 : f32 to vector<8x128xf32>
    %94 = arith.select %89, %92, %93 : vector<8x128xi1>, vector<8x128xf32>
    %95 = arith.addf %86, %94 : vector<8x128xf32>
    %96 = vector.extract_strided_slice %1 {offsets = [0, 10], sizes = [8, 1], strides = [1, 1]} : vector<8x16xi32> to vector<8x1xi32>
    %97 = vector.broadcast %96 : vector<8x1xi32> to vector<8x128xi32>
    %98 = arith.cmpi eq, %97, %0 : vector<8x128xi32>
    %99 = vector.extract_strided_slice %2 {offsets = [0, 10], sizes = [8, 1], strides = [1, 1]} : vector<8x16xf32> to vector<8x1xf32>
    %cst_17 = arith.constant 0.000000e+00 : f32
    %100 = vector.shape_cast %99 : vector<8x1xf32> to vector<8x1xf32>
    %101 = vector.broadcast %100 : vector<8x1xf32> to vector<8x128xf32>
    %102 = vector.broadcast %cst_17 : f32 to vector<8x128xf32>
    %103 = arith.select %98, %101, %102 : vector<8x128xi1>, vector<8x128xf32>
    %104 = arith.addf %95, %103 : vector<8x128xf32>
    %105 = vector.extract_strided_slice %1 {offsets = [0, 11], sizes = [8, 1], strides = [1, 1]} : vector<8x16xi32> to vector<8x1xi32>
    %106 = vector.broadcast %105 : vector<8x1xi32> to vector<8x128xi32>
    %107 = arith.cmpi eq, %106, %0 : vector<8x128xi32>
    %108 = vector.extract_strided_slice %2 {offsets = [0, 11], sizes = [8, 1], strides = [1, 1]} : vector<8x16xf32> to vector<8x1xf32>
    %cst_18 = arith.constant 0.000000e+00 : f32
    %109 = vector.shape_cast %108 : vector<8x1xf32> to vector<8x1xf32>
    %110 = vector.broadcast %109 : vector<8x1xf32> to vector<8x128xf32>
    %111 = vector.broadcast %cst_18 : f32 to vector<8x128xf32>
    %112 = arith.select %107, %110, %111 : vector<8x128xi1>, vector<8x128xf32>
    %113 = arith.addf %104, %112 : vector<8x128xf32>
    %114 = vector.extract_strided_slice %1 {offsets = [0, 12], sizes = [8, 1], strides = [1, 1]} : vector<8x16xi32> to vector<8x1xi32>
    %115 = vector.broadcast %114 : vector<8x1xi32> to vector<8x128xi32>
    %116 = arith.cmpi eq, %115, %0 : vector<8x128xi32>
    %117 = vector.extract_strided_slice %2 {offsets = [0, 12], sizes = [8, 1], strides = [1, 1]} : vector<8x16xf32> to vector<8x1xf32>
    %cst_19 = arith.constant 0.000000e+00 : f32
    %118 = vector.shape_cast %117 : vector<8x1xf32> to vector<8x1xf32>
    %119 = vector.broadcast %118 : vector<8x1xf32> to vector<8x128xf32>
    %120 = vector.broadcast %cst_19 : f32 to vector<8x128xf32>
    %121 = arith.select %116, %119, %120 : vector<8x128xi1>, vector<8x128xf32>
    %122 = arith.addf %113, %121 : vector<8x128xf32>
    %123 = vector.extract_strided_slice %1 {offsets = [0, 13], sizes = [8, 1], strides = [1, 1]} : vector<8x16xi32> to vector<8x1xi32>
    %124 = vector.broadcast %123 : vector<8x1xi32> to vector<8x128xi32>
    %125 = arith.cmpi eq, %124, %0 : vector<8x128xi32>
    %126 = vector.extract_strided_slice %2 {offsets = [0, 13], sizes = [8, 1], strides = [1, 1]} : vector<8x16xf32> to vector<8x1xf32>
    %cst_20 = arith.constant 0.000000e+00 : f32
    %127 = vector.shape_cast %126 : vector<8x1xf32> to vector<8x1xf32>
    %128 = vector.broadcast %127 : vector<8x1xf32> to vector<8x128xf32>
    %129 = vector.broadcast %cst_20 : f32 to vector<8x128xf32>
    %130 = arith.select %125, %128, %129 : vector<8x128xi1>, vector<8x128xf32>
    %131 = arith.addf %122, %130 : vector<8x128xf32>
    %132 = vector.extract_strided_slice %1 {offsets = [0, 14], sizes = [8, 1], strides = [1, 1]} : vector<8x16xi32> to vector<8x1xi32>
    %133 = vector.broadcast %132 : vector<8x1xi32> to vector<8x128xi32>
    %134 = arith.cmpi eq, %133, %0 : vector<8x128xi32>
    %135 = vector.extract_strided_slice %2 {offsets = [0, 14], sizes = [8, 1], strides = [1, 1]} : vector<8x16xf32> to vector<8x1xf32>
    %cst_21 = arith.constant 0.000000e+00 : f32
    %136 = vector.shape_cast %135 : vector<8x1xf32> to vector<8x1xf32>
    %137 = vector.broadcast %136 : vector<8x1xf32> to vector<8x128xf32>
    %138 = vector.broadcast %cst_21 : f32 to vector<8x128xf32>
    %139 = arith.select %134, %137, %138 : vector<8x128xi1>, vector<8x128xf32>
    %140 = arith.addf %131, %139 : vector<8x128xf32>
    %141 = vector.extract_strided_slice %1 {offsets = [0, 15], sizes = [8, 1], strides = [1, 1]} : vector<8x16xi32> to vector<8x1xi32>
    %142 = vector.broadcast %141 : vector<8x1xi32> to vector<8x128xi32>
    %143 = arith.cmpi eq, %142, %0 : vector<8x128xi32>
    %144 = vector.extract_strided_slice %2 {offsets = [0, 15], sizes = [8, 1], strides = [1, 1]} : vector<8x16xf32> to vector<8x1xf32>
    %cst_22 = arith.constant 0.000000e+00 : f32
    %145 = vector.shape_cast %144 : vector<8x1xf32> to vector<8x1xf32>
    %146 = vector.broadcast %145 : vector<8x1xf32> to vector<8x128xf32>
    %147 = vector.broadcast %cst_22 : f32 to vector<8x128xf32>
    %148 = arith.select %143, %146, %147 : vector<8x128xi1>, vector<8x128xf32>
    %149 = arith.addf %140, %148 : vector<8x128xf32>
    %cst_23 = arith.constant 0.000000e+00 : f32
    %150 = vector.broadcast %cst_23 : f32 to vector<8x128xf32>
    %151 = vector.extract_strided_slice %3 {offsets = [0, 0], sizes = [8, 1], strides = [1, 1]} : vector<8x8xi32> to vector<8x1xi32>
    %152 = vector.broadcast %151 : vector<8x1xi32> to vector<8x128xi32>
    %153 = arith.cmpi eq, %152, %0 : vector<8x128xi32>
    %154 = vector.extract_strided_slice %4 {offsets = [0, 0], sizes = [8, 1], strides = [1, 1]} : vector<8x8xf32> to vector<8x1xf32>
    %cst_24 = arith.constant 0.000000e+00 : f32
    %155 = vector.shape_cast %154 : vector<8x1xf32> to vector<8x1xf32>
    %156 = vector.broadcast %155 : vector<8x1xf32> to vector<8x128xf32>
    %157 = vector.broadcast %cst_24 : f32 to vector<8x128xf32>
    %158 = arith.select %153, %156, %157 : vector<8x128xi1>, vector<8x128xf32>
    %159 = arith.addf %150, %158 : vector<8x128xf32>
    %160 = vector.extract_strided_slice %3 {offsets = [0, 1], sizes = [8, 1], strides = [1, 1]} : vector<8x8xi32> to vector<8x1xi32>
    %161 = vector.broadcast %160 : vector<8x1xi32> to vector<8x128xi32>
    %162 = arith.cmpi eq, %161, %0 : vector<8x128xi32>
    %163 = vector.extract_strided_slice %4 {offsets = [0, 1], sizes = [8, 1], strides = [1, 1]} : vector<8x8xf32> to vector<8x1xf32>
    %cst_25 = arith.constant 0.000000e+00 : f32
    %164 = vector.shape_cast %163 : vector<8x1xf32> to vector<8x1xf32>
    %165 = vector.broadcast %164 : vector<8x1xf32> to vector<8x128xf32>
    %166 = vector.broadcast %cst_25 : f32 to vector<8x128xf32>
    %167 = arith.select %162, %165, %166 : vector<8x128xi1>, vector<8x128xf32>
    %168 = arith.addf %159, %167 : vector<8x128xf32>
    %169 = vector.extract_strided_slice %3 {offsets = [0, 2], sizes = [8, 1], strides = [1, 1]} : vector<8x8xi32> to vector<8x1xi32>
    %170 = vector.broadcast %169 : vector<8x1xi32> to vector<8x128xi32>
    %171 = arith.cmpi eq, %170, %0 : vector<8x128xi32>
    %172 = vector.extract_strided_slice %4 {offsets = [0, 2], sizes = [8, 1], strides = [1, 1]} : vector<8x8xf32> to vector<8x1xf32>
    %cst_26 = arith.constant 0.000000e+00 : f32
    %173 = vector.shape_cast %172 : vector<8x1xf32> to vector<8x1xf32>
    %174 = vector.broadcast %173 : vector<8x1xf32> to vector<8x128xf32>
    %175 = vector.broadcast %cst_26 : f32 to vector<8x128xf32>
    %176 = arith.select %171, %174, %175 : vector<8x128xi1>, vector<8x128xf32>
    %177 = arith.addf %168, %176 : vector<8x128xf32>
    %178 = vector.extract_strided_slice %3 {offsets = [0, 3], sizes = [8, 1], strides = [1, 1]} : vector<8x8xi32> to vector<8x1xi32>
    %179 = vector.broadcast %178 : vector<8x1xi32> to vector<8x128xi32>
    %180 = arith.cmpi eq, %179, %0 : vector<8x128xi32>
    %181 = vector.extract_strided_slice %4 {offsets = [0, 3], sizes = [8, 1], strides = [1, 1]} : vector<8x8xf32> to vector<8x1xf32>
    %cst_27 = arith.constant 0.000000e+00 : f32
    %182 = vector.shape_cast %181 : vector<8x1xf32> to vector<8x1xf32>
    %183 = vector.broadcast %182 : vector<8x1xf32> to vector<8x128xf32>
    %184 = vector.broadcast %cst_27 : f32 to vector<8x128xf32>
    %185 = arith.select %180, %183, %184 : vector<8x128xi1>, vector<8x128xf32>
    %186 = arith.addf %177, %185 : vector<8x128xf32>
    %187 = vector.extract_strided_slice %3 {offsets = [0, 4], sizes = [8, 1], strides = [1, 1]} : vector<8x8xi32> to vector<8x1xi32>
    %188 = vector.broadcast %187 : vector<8x1xi32> to vector<8x128xi32>
    %189 = arith.cmpi eq, %188, %0 : vector<8x128xi32>
    %190 = vector.extract_strided_slice %4 {offsets = [0, 4], sizes = [8, 1], strides = [1, 1]} : vector<8x8xf32> to vector<8x1xf32>
    %cst_28 = arith.constant 0.000000e+00 : f32
    %191 = vector.shape_cast %190 : vector<8x1xf32> to vector<8x1xf32>
    %192 = vector.broadcast %191 : vector<8x1xf32> to vector<8x128xf32>
    %193 = vector.broadcast %cst_28 : f32 to vector<8x128xf32>
    %194 = arith.select %189, %192, %193 : vector<8x128xi1>, vector<8x128xf32>
    %195 = arith.addf %186, %194 : vector<8x128xf32>
    %196 = vector.extract_strided_slice %3 {offsets = [0, 5], sizes = [8, 1], strides = [1, 1]} : vector<8x8xi32> to vector<8x1xi32>
    %197 = vector.broadcast %196 : vector<8x1xi32> to vector<8x128xi32>
    %198 = arith.cmpi eq, %197, %0 : vector<8x128xi32>
    %199 = vector.extract_strided_slice %4 {offsets = [0, 5], sizes = [8, 1], strides = [1, 1]} : vector<8x8xf32> to vector<8x1xf32>
    %cst_29 = arith.constant 0.000000e+00 : f32
    %200 = vector.shape_cast %199 : vector<8x1xf32> to vector<8x1xf32>
    %201 = vector.broadcast %200 : vector<8x1xf32> to vector<8x128xf32>
    %202 = vector.broadcast %cst_29 : f32 to vector<8x128xf32>
    %203 = arith.select %198, %201, %202 : vector<8x128xi1>, vector<8x128xf32>
    %204 = arith.addf %195, %203 : vector<8x128xf32>
    %205 = vector.extract_strided_slice %3 {offsets = [0, 6], sizes = [8, 1], strides = [1, 1]} : vector<8x8xi32> to vector<8x1xi32>
    %206 = vector.broadcast %205 : vector<8x1xi32> to vector<8x128xi32>
    %207 = arith.cmpi eq, %206, %0 : vector<8x128xi32>
    %208 = vector.extract_strided_slice %4 {offsets = [0, 6], sizes = [8, 1], strides = [1, 1]} : vector<8x8xf32> to vector<8x1xf32>
    %cst_30 = arith.constant 0.000000e+00 : f32
    %209 = vector.shape_cast %208 : vector<8x1xf32> to vector<8x1xf32>
    %210 = vector.broadcast %209 : vector<8x1xf32> to vector<8x128xf32>
    %211 = vector.broadcast %cst_30 : f32 to vector<8x128xf32>
    %212 = arith.select %207, %210, %211 : vector<8x128xi1>, vector<8x128xf32>
    %213 = arith.addf %204, %212 : vector<8x128xf32>
    %214 = vector.extract_strided_slice %3 {offsets = [0, 7], sizes = [8, 1], strides = [1, 1]} : vector<8x8xi32> to vector<8x1xi32>
    %215 = vector.broadcast %214 : vector<8x1xi32> to vector<8x128xi32>
    %216 = arith.cmpi eq, %215, %0 : vector<8x128xi32>
    %217 = vector.extract_strided_slice %4 {offsets = [0, 7], sizes = [8, 1], strides = [1, 1]} : vector<8x8xf32> to vector<8x1xf32>
    %cst_31 = arith.constant 0.000000e+00 : f32
    %218 = vector.shape_cast %217 : vector<8x1xf32> to vector<8x1xf32>
    %219 = vector.broadcast %218 : vector<8x1xf32> to vector<8x128xf32>
    %220 = vector.broadcast %cst_31 : f32 to vector<8x128xf32>
    %221 = arith.select %216, %219, %220 : vector<8x128xi1>, vector<8x128xf32>
    %222 = arith.addf %213, %221 : vector<8x128xf32>
    %c0_32 = arith.constant 0 : index
    %c0_33 = arith.constant 0 : index
    %223 = vector.load %arg5[%c0_32, %c0_33] : memref<128x384xf32, #tpu.memory_space<vmem>>, vector<128x384xf32>
    %cst_34 = arith.constant dense<0.000000e+00> : vector<8x384xf32>
    %224 = tpu.matmul %149, %223, %cst_34 {dimension_numbers = #tpu.dot_dimension_numbers<[1], [0], [0], [1], [0, 0, 1, 1], [], []>} : vector<8x128xf32>, vector<128x384xf32>, vector<8x384xf32> -> vector<8x384xf32>
    %cst_35 = arith.constant dense<0.000000e+00> : vector<8x384xf32>
    %225 = tpu.matmul %222, %223, %cst_35 {dimension_numbers = #tpu.dot_dimension_numbers<[1], [0], [0], [1], [0, 0, 1, 1], [], []>} : vector<8x128xf32>, vector<128x384xf32>, vector<8x384xf32> -> vector<8x384xf32>
    %226 = math.absf %224 : vector<8x384xf32>
    %227 = arith.addf %226, %225 : vector<8x384xf32>
    %c0_36 = arith.constant 0 : index
    %c0_37 = arith.constant 0 : index
    %228 = vector.load %arg6[%c0_36, %c0_37] : memref<8x384xf32, #tpu.memory_space<vmem>>, vector<8x384xf32>
    tpu.vector_store %arg6[%c0_36, %c0_37], %227 {strides = array<i32>} : memref<8x384xf32, #tpu.memory_space<vmem>>, vector<8x384xf32>,
    return
  }
  func.func @transform_0(%arg0: i32) -> (i32, i32) {
    %c0_i32 = arith.constant 0 : i32
    %c0_i32_0 = arith.constant 0 : i32
    return %arg0, %c0_i32 : i32, i32
  }
  func.func @transform_1(%arg0: i32) -> (i32, i32) {
    %c0_i32 = arith.constant 0 : i32
    %c0_i32_0 = arith.constant 0 : i32
    return %arg0, %c0_i32 : i32, i32
  }
  func.func @transform_2(%arg0: i32) -> (i32, i32) {
    %c0_i32 = arith.constant 0 : i32
    %c0_i32_0 = arith.constant 0 : i32
    return %arg0, %c0_i32 : i32, i32
  }
  func.func @transform_3(%arg0: i32) -> (i32, i32) {
    %c0_i32 = arith.constant 0 : i32
    %c0_i32_0 = arith.constant 0 : i32
    return %arg0, %c0_i32 : i32, i32
  }
  func.func @transform_4(%arg0: i32) -> (i32, i32) {
    %c0_i32 = arith.constant 0 : i32
    %c0_i32_0 = arith.constant 0 : i32
    %c0_i32_1 = arith.constant 0 : i32
    return %c0_i32, %c0_i32_0 : i32, i32
  }
  func.func @transform_5(%arg0: i32) -> (i32, i32) {
    %c0_i32 = arith.constant 0 : i32
    %c0_i32_0 = arith.constant 0 : i32
    return %arg0, %c0_i32 : i32, i32
  }
}

</mosaic_0001>

<bundles_post_ra>
// kernel: tpu_custom_call.1
= control target key start
LH: loop header
LB: loop body
LE: loop exit
PB: predicated region body
PF: predicated region fallthrough
CT: control target
= control target key end

     0   :  { %10 = vsyncpa [#allocation3], 0  ;;  %s1433_s0 = inlined_call_operand.hbm [shape: s32[8,16], index: 0, kind: input, shape index: {}]   ;;  %s1434_s1 = inlined_call_operand.hbm [shape: f32[8,16], index: 1, kind: input, shape index: {}]   ;;  %s1435_s2 = inlined_call_operand.hbm [shape: s32[8,8], index: 2, kind: input, shape index: {}]   ;;  %s1436_s3 = inlined_call_operand.vmem [shape: f32[8,8], index: 3, kind: input, shape index: {}]   ;;  %s1437_s4 = inlined_call_operand.hbm [shape: f32[128,384], index: 4, kind: input, shape index: {}]   ;;  %s1438_s5 = inlined_call_operand.hbm [shape: f32[8,384], index: 5, kind: output, shape index: {}]  }
   0x1   :  { %11 = vsyncpa [#allocation6], 0 }
   0x2   :  { %12 = vsyncpa [#allocation9], 0 }
   0x3   :  { %13 = vsyncpa [#allocation4], 0  ;;  %s1075_s18 = smov [#allocation5]   ;;  %s1076_s20 = smov [#allocation2]  }
   0x4   :  { %s30_s19 = sshll.u32 %s1075_s18, 4  ;;  %s20_s21 = sshll.u32 %s1076_s20, 4  ;;  %s31_s19 = int_to_ptr.vmem [resolvable:$true] %s30_s19  ;;  %s21_s21 = int_to_ptr.vmem [resolvable:$true] %s20_s21 }
   0x5   :  { %s957_s24 = scalar_lea.hbm %s1434_s1, 128 }
   0x6   :  { %p958_p0 = scmp.ne.s32.totalorder %s1434_s1, %s957_s24  ;;  %p961_p1 = scmp.lt.u32.totalorder %s957_s24, %s1434_s1 }
   0x8   :  { %p963_p2 = pnand %p961_p1, %p958_p0 }
   0xa   :  { %966 = shalt.err (!%p963_p2)
}
   0xb   :  { %s967_s29 = scalar_lea.vmem %s31_s19, 128  ;;  %p972_p4 = scmp.lt.s32.totalorder %s31_s19, %s31_s19 }
   0xc   :  { %p968_p3 = scmp.ne.s32.totalorder %s31_s19, %s967_s29  ;;  %p973_p5 = scmp.lt.s32.totalorder %s967_s29, %s967_s29 }
   0xe   :  { %p974_p6 = por %p973_p5, %p972_p4 }
  0x10   :  { %p975_p7 = pnand %p974_p6, %p968_p3 }
  0x12   :  { %978 = shalt.err (!%p975_p7)
}
  0x13   :  { %33 = dma.hbm_to_vmem [thread:$0]  %s1434_s1, 128, %s31_s19, [#allocation6]  }
  0x14   :  { %s979_s9 = scalar_lea.hbm %s1433_s0, 128 }
  0x15   :  { %p980_p8 = scmp.ne.s32.totalorder %s1433_s0, %s979_s9  ;;  %p983_p9 = scmp.lt.u32.totalorder %s979_s9, %s1433_s0 }
  0x17   :  { %p985_p10 = pnand %p983_p9, %p980_p8 }
  0x19   :  { %988 = shalt.err (!%p985_p10)
}
  0x1a   :  { %s989_s14 = scalar_lea.vmem %s21_s21, 128  ;;  %p994_p12 = scmp.lt.s32.totalorder %s21_s21, %s21_s21 }
  0x1b   :  { %p990_p11 = scmp.ne.s32.totalorder %s21_s21, %s989_s14  ;;  %p995_p13 = scmp.lt.s32.totalorder %s989_s14, %s989_s14 }
  0x1d   :  { %p996_p0 = por %p995_p13, %p994_p12 }
  0x1f   :  { %p997_p1 = pnand %p996_p0, %p990_p11 }
  0x21   :  { %1000 = shalt.err (!%p997_p1)
}
  0x22   :  { %23 = dma.hbm_to_vmem [thread:$0]  %s1433_s0, 128, %s21_s21, [#allocation3]  }
  0x23   :  { %s1077_s16 = smov [#allocation7]   ;;  %s1078_s18 = smov [#allocation8]  }
  0x24   :  { %s40_s17 = sshll.u32 %s1077_s16, 4  ;;  %s51_s19 = sshll.u32 %s1078_s18, 4  ;;  %s41_s17 = int_to_ptr.vmem [resolvable:$true] %s40_s17  ;;  %s1155_s19 = int_to_ptr.vmem [resolvable:$true] %s51_s19 }
  0x25   :  { %s1001_s23 = scalar_lea.hbm %s1435_s2, 128 }
  0x26   :  { %p1002_p2 = scmp.ne.s32.totalorder %s1435_s2, %s1001_s23  ;;  %p1005_p3 = scmp.lt.u32.totalorder %s1001_s23, %s1435_s2 }
  0x28   :  { %p1007_p4 = pnand %p1005_p3, %p1002_p2 }
  0x2a   :  { %1010 = shalt.err (!%p1007_p4)
}
  0x2b   :  { %s1011_s0 = scalar_lea.vmem %s41_s17, 128  ;;  %p1016_p6 = scmp.lt.s32.totalorder %s41_s17, %s41_s17 }
  0x2c   :  { %p1012_p5 = scmp.ne.s32.totalorder %s41_s17, %s1011_s0  ;;  %p1017_p7 = scmp.lt.s32.totalorder %s1011_s0, %s1011_s0 }
  0x2e   :  { %p1018_p8 = por %p1017_p7, %p1016_p6 }
  0x30   :  { %p1019_p9 = pnand %p1018_p8, %p1012_p5 }
  0x32   :  { %1022 = shalt.err (!%p1019_p9)
}
  0x33   :  { %43 = dma.hbm_to_vmem [thread:$0]  %s1435_s2, 128, %s41_s17, [#allocation6]  }
  0x34   :  { %s1023_s6 = scalar_lea.hbm %s1437_s4, 6144 }
  0x35   :  { %p1024_p10 = scmp.ne.s32.totalorder %s1437_s4, %s1023_s6  ;;  %p1027_p11 = scmp.lt.u32.totalorder %s1023_s6, %s1437_s4 }
  0x37   :  { %p1029_p12 = pnand %p1027_p11, %p1024_p10 }
  0x39   :  { %1032 = shalt.err (!%p1029_p12)
}
  0x3a   :  { %s1033_s11 = scalar_lea.vmem %s1155_s19, 6144  ;;  %p1038_p0 = scmp.lt.s32.totalorder %s1155_s19, %s1155_s19 }
  0x3b   :  { %p1034_p13 = scmp.ne.s32.totalorder %s1155_s19, %s1033_s11  ;;  %p1039_p1 = scmp.lt.s32.totalorder %s1033_s11, %s1033_s11 }
  0x3d   :  { %p1040_p2 = por %p1039_p1, %p1038_p0 }
  0x3f   :  { %p1041_p3 = pnand %p1040_p2, %p1034_p13 }
  0x41   :  { %1044 = shalt.err (!%p1041_p3)
}
  0x42   :  { %s1079_s2 = smov 384   ;;  %s1080_s12 = smov 24  }
  0x43   :  { %57 = dma.hbm_to_vmem [thread:$0]  %s1437_s4, 6144, %s1155_s19, [#allocation9], %s1079_s2, %s1079_s2, %s1080_s12  }
  0x44   :  { %1067 = dma.done.wait [#allocation3], 128  }
  0x45   :  { %1068 = vsyncadd [#allocation3], 4294967168 }
  0x46   :  { %1069 = dma.done.wait [#allocation6], 256  }
  0x47   :  { %1070 = vsyncadd [#allocation6], 4294967040 }
  0x48   :  { %1071 = dma.done.wait [#allocation9], 6144  }
  0x49   :  { %1072 = vsyncadd [#allocation9], 4294961152  ;;  %v1081_v0 = vmov 0   ;;  %v1188_v1 = vld [vmem:[#allocation5] sm:$0xff]  ;;  %v1190_v2 = vld [vmem:[#allocation2] sm:$0xff]  ;;  %v1082_v3 = vmov 1  }
  0x4a   :  { %918 = vset.pattern.permute.xlu1 %v1081_v0  ;;  %916 = vset.pattern.permute.xlu0 %v1081_v0  ;;  %v1083_v4 = vmov 2   ;;  %v1084_v5 = vmov 3   ;;  %v1085_v6 = vmov 4   ;;  %v1086_v7 = vmov 5   ;;  %v1228_v16 = vld [vmem:[#allocation7] sm:$0xff]  ;;  %v1237_v17 = vld [vmem:[%s1436_s3] sm:$0xff] }
  0x4b   :  { %82 = vperm.xlu1 %918, %v1188_v1   ;;  %77 = vperm.xlu0 %916, %v1190_v2   ;;  %v1087_v8 = vmov 7   ;;  %v1088_v9 = vmov 8   ;;  %v1089_v10 = vmov 6   ;;  %v1090_v11 = vmov 10   ;;  %v319_v18 = vld [vmem:[#allocation8 + $0x8] sm:$0xff]  ;;  %v322_v19 = vld [vmem:[#allocation8 + $0x20] sm:$0xff] }
  0x4c   :  { %v1091_v12 = vmov 11   ;;  %v1092_v13 = vmov 13   ;;  %v1093_v14 = vmov 14   ;;  %v1094_v15 = vmov 9   ;;  %v318_v22 = vld [vmem:[#allocation8] sm:$0xff]  ;;  %v321_v23 = vld [vmem:[#allocation8 + $0x18] sm:$0xff] }
  0x4d   :  { %v1243_v20 = vpack.c.bf16 %v322_v19, %v319_v18  ;;  %v1095_v21 = vmov 0.0|0.0   ;;  %v320_v24 = vld [vmem:[#allocation8 + $0x10] sm:$0xff]  ;;  %v1247_v25 = vpack.c.bf16 %v321_v23, %v318_v22  ;;  %v323_v26 = vld [vmem:[#allocation8 + $0x28] sm:$0xff]  ;;  %v325_v28 = vld [vmem:[#allocation8 + $0x38] sm:$0xff]  ;;  %v1096_v37 = vmov 12   ;;  %s1100_s3 = smov [#allocation10]  }
  0x4e   :  { %810 = vmatprep.subr.bf16.mxu1 %v1095_v21  ;;  %v1250_v27 = vpack.c.bf16 %v323_v26, %v320_v24  ;;  %v328_v29 = vld [vmem:[#allocation8 + $0x50] sm:$0xff]  ;;  %v327_v32 = vld [vmem:[#allocation8 + $0x48] sm:$0xff]  ;;  %v326_v33 = vld [vmem:[#allocation8 + $0x40] sm:$0xff]  ;;  %vm1099_vm0 = vmmov 0   ;;  %s663_s15 = sshll.u32 %s1100_s3, 4  ;;  %s664_s15 = int_to_ptr.vmem [resolvable:$true] %s663_s15 }
  0x4f   :  { %919 = vset.pattern.permute.xlu1 %v1082_v3  ;;  %917 = vset.pattern.permute.xlu0 %v1082_v3  ;;  %v1255_v30 = vpack.c.bf16 %v328_v29, %v325_v28  ;;  %v324_v31 = vld [vmem:[#allocation8 + $0x30] sm:$0xff]  ;;  %v329_v35 = vld [vmem:[#allocation8 + $0x58] sm:$0xff]  ;;  %v331_v38 = vld [vmem:[#allocation8 + $0x68] sm:$0xff]  ;;  %s1045_s16 = scalar_lea.vmem %s664_s15, 384  ;;  %p1050_p5 = scmp.lt.s32.totalorder %s664_s15, %s664_s15 }
  0x50   :  { %92 = vperm.xlu1 %919, %v1188_v1   ;;  %88 = vperm.xlu0 %917, %v1190_v2   ;;  %v1259_v34 = vpack.c.bf16 %v327_v32, %v324_v31  ;;  %v1263_v36 = vpack.c.bf16 %v329_v35, %v326_v33  ;;  %v334_v39 = vld [vmem:[#allocation8 + $0x80] sm:$0xff]  ;;  %v333_v42 = vld [vmem:[#allocation8 + $0x78] sm:$0xff]  ;;  %v332_v43 = vld [vmem:[#allocation8 + $0x70] sm:$0xff]  ;;  %p1046_p4 = scmp.ne.s32.totalorder %s664_s15, %s1045_s16  ;;  %p1051_p6 = scmp.lt.s32.totalorder %s1045_s16, %s1045_s16 }
  0x51   :  { %779 = vmatprep.subr.bf16.mxu0 %v1243_v20  ;;  %812 = vmatpush3.bf16.msra.mxu1 %v1250_v27  ;;  %v1268_v40 = vpack.c.bf16 %v334_v39, %v331_v38  ;;  %v330_v41 = vld [vmem:[#allocation8 + $0x60] sm:$0xff]  ;;  %v335_v45 = vld [vmem:[#allocation8 + $0x88] sm:$0xff]  ;;  %v337_v47 = vld [vmem:[#allocation8 + $0x98] sm:$0xff] }
  0x52   :  { %781 = vmatpush1.bf16.msra.mxu0 %v1247_v25  ;;  %813 = vmatprep.subr.bf16.mxu1 %v1095_v21  ;;  %v1271_v44 = vpack.c.bf16 %v333_v42, %v330_v41  ;;  %v1275_v46 = vpack.c.bf16 %v335_v45, %v332_v43  ;;  %v340_v48 = vld [vmem:[#allocation8 + $0xb0] sm:$0xff]  ;;  %v339_v51 = vld [vmem:[#allocation8 + $0xa8] sm:$0xff]  ;;  %v338_v52 = vld [vmem:[#allocation8 + $0xa0] sm:$0xff]  ;;  %p1052_p7 = por %p1051_p6, %p1050_p5 }
  0x53   :  { %783 = vmatprep.subr.bf16.mxu0 %v1255_v30  ;;  %v1281_v49 = vpack.c.bf16 %v340_v48, %v337_v47  ;;  %v336_v50 = vld [vmem:[#allocation8 + $0x90] sm:$0xff]  ;;  %v341_v54 = vld [vmem:[#allocation8 + $0xb8] sm:$0xff]  ;;  %v343_v56 = vld [vmem:[#allocation8 + $0xc8] sm:$0xff] }
  0x54   :  { %920 = vset.pattern.permute.xlu1 %v1083_v4  ;;  %921 = vset.pattern.permute.xlu0 %v1083_v4  ;;  %v1284_v53 = vpack.c.bf16 %v339_v51, %v336_v50  ;;  %v1287_v55 = vpack.c.bf16 %v341_v54, %v338_v52  ;;  %v346_v57 = vld [vmem:[#allocation8 + $0xe0] sm:$0xff]  ;;  %v345_v60 = vld [vmem:[#allocation8 + $0xd8] sm:$0xff]  ;;  %v344_v61 = vld [vmem:[#allocation8 + $0xd0] sm:$0xff]  ;;  %v1098_v51 = vmov 0.0   ;;  %p1053_p8 = pnand %p1052_p7, %p1046_p4 }
  0x55   :  { %98 = vperm.xlu1 %920, %v1190_v2   ;;  %102 = vperm.xlu0 %921, %v1188_v1   ;;  %v1293_v58 = vpack.c.bf16 %v346_v57, %v343_v56  ;;  %v342_v59 = vld [vmem:[#allocation8 + $0xc0] sm:$0xff]  ;;  %v347_v63 = vld [vmem:[#allocation8 + $0xe8] sm:$0xff]  ;;  %v353_v23 = vld [vmem:[#allocation8 + $0x118] sm:$0xff] }
  0x56   :  { %785 = vmatpush1.bf16.msra.mxu0 %v1259_v34  ;;  %815 = vmatpush3.bf16.msra.mxu1 %v1263_v36  ;;  %v1297_v62 = vpack.c.bf16 %v345_v60, %v342_v59  ;;  %v351_v18 = vld [vmem:[#allocation8 + $0x108] sm:$0xff]  ;;  %v350_v19 = vld [vmem:[#allocation8 + $0x100] sm:$0xff]  ;;  %v357_v31 = vld [vmem:[#allocation8 + $0x138] sm:$0xff] }
  0x57   :  { %816 = vmatprep.subr.bf16.mxu1 %v1095_v21  ;;  %787 = vmatprep.subr.bf16.mxu0 %v1268_v40  ;;  %v1312_v24 = vpack.c.bf16 %v353_v23, %v350_v19  ;;  %v355_v26 = vld [vmem:[#allocation8 + $0x128] sm:$0xff]  ;;  %v358_v28 = vld [vmem:[#allocation8 + $0x140] sm:$0xff]  ;;  %v356_v32 = vld [vmem:[#allocation8 + $0x130] sm:$0xff] }
  0x58   :  { %v1316_v29 = vpack.c.bf16 %v358_v28, %v355_v26  ;;  %v359_v35 = vld [vmem:[#allocation8 + $0x148] sm:$0xff]  ;;  %v361_v39 = vld [vmem:[#allocation8 + $0x158] sm:$0xff]  ;;  %v364_v41 = vld [vmem:[#allocation8 + $0x170] sm:$0xff]  ;;  %430 = vmatprep.mubr.f32.mxu0 %v1098_v51  ;;  %740 = vmatprep.mubr.msk.f32.mxu1 %vm1099_vm0, %v1098_v51 }
  0x59   :  { %922 = vset.pattern.permute.xlu1 %v1084_v5  ;;  %923 = vset.pattern.permute.xlu0 %v1085_v6  ;;  %v1322_v38 = vpack.c.bf16 %v359_v35, %v356_v32  ;;  %v1327_v42 = vpack.c.bf16 %v364_v41, %v361_v39  ;;  %v360_v43 = vld [vmem:[#allocation8 + $0x150] sm:$0xff]  ;;  %v363_v45 = vld [vmem:[#allocation8 + $0x168] sm:$0xff]  ;;  %v362_v47 = vld [vmem:[#allocation8 + $0x160] sm:$0xff] }
  0x5a   :  { %108 = vperm.xlu1 %922, %v1190_v2   ;;  %118 = vperm.xlu0 %923, %v1190_v2   ;;  %v1330_v48 = vpack.c.bf16 %v363_v45, %v360_v43  ;;  %v365_v50 = vld [vmem:[#allocation8 + $0x178] sm:$0xff] }
  0x5b   :  { %789 = vmatpush1.bf16.msra.mxu0 %v1271_v44  ;;  %818 = vmatpush3.bf16.msra.mxu1 %v1275_v46 }
  0x5c   :  { %819 = vmatprep.subr.bf16.mxu1 %v1095_v21  ;;  %791 = vmatprep.subr.bf16.mxu0 %v1281_v49 }
  0x5e   :  { %112 = vperm.xlu1 %922, %v1188_v1   ;;  %926 = vset.pattern.permute.xlu0 %v1086_v7 }
  0x5f   :  { %132 = vperm.xlu0 %926, %v1188_v1   ;;  %793 = vmatpush1.bf16.msra.mxu0 %v1284_v53 }
  0x60   :  { %821 = vmatpush3.bf16.msra.mxu1 %v1287_v55  ;;  %795 = vmatprep.subr.bf16.mxu0 %v1293_v58 }
  0x61   :  { %822 = vmatprep.subr.bf16.mxu1 %v1095_v21 }
  0x62   :  { %924 = vset.pattern.permute.xlu1 %v1085_v6 }
  0x63   :  { %122 = vperm.xlu1 %924, %v1188_v1   ;;  %928 = vset.pattern.permute.xlu0 %v1087_v8 }
  0x64   :  { %148 = vperm.xlu0 %928, %v1190_v2   ;;  %797 = vmatpush1.bf16.msra.mxu0 %v1297_v62 }
  0x67   :  { %925 = vset.pattern.permute.xlu1 %v1086_v7 }
  0x68   :  { %128 = vperm.xlu1 %925, %v1190_v2   ;;  %931 = vset.pattern.permute.xlu0 %v1088_v9 }
  0x69   :  { %162 = vperm.xlu0 %931, %v1188_v1  }
  0x6c   :  { %927 = vset.pattern.permute.xlu1 %v1089_v10 }
  0x6d   :  { %138 = vperm.xlu1 %927, %v1190_v2   ;;  %933 = vset.pattern.permute.xlu0 %v1090_v11 }
  0x6e   :  { %178 = vperm.xlu0 %933, %v1190_v2  }
  0x71   :  { %142 = vperm.xlu1 %927, %v1188_v1  }
  0x72   :  { %936 = vset.pattern.permute.xlu0 %v1091_v12 }
  0x73   :  { %192 = vperm.xlu0 %936, %v1188_v1  }
  0x75   :  { %929 = vset.pattern.permute.xlu1 %v1087_v8 }
  0x76   :  { %152 = vperm.xlu1 %929, %v1188_v1  }
  0x77   :  { %938 = vset.pattern.permute.xlu0 %v1092_v13 }
  0x78   :  { %208 = vperm.xlu0 %938, %v1190_v2  }
  0x7a   :  { %930 = vset.pattern.permute.xlu1 %v1088_v9  ;;  %v1301_v9 = vpack.c.bf16 %v347_v63, %v344_v61 }
  0x7b   :  { %158 = vperm.xlu1 %930, %v1190_v2  }
  0x7c   :  { %941 = vset.pattern.permute.xlu0 %v1093_v14  ;;  %824 = vmatpush3.bf16.msra.mxu1 %v1301_v9 }
  0x7d   :  { %222 = vperm.xlu0 %941, %v1188_v1   ;;  %825 = vmatprep.subr.bf16.mxu1 %v1095_v21 }
  0x7f   :  { %932 = vset.pattern.permute.xlu1 %v1094_v15  ;;  %v348_v15 = vld [vmem:[#allocation8 + $0xf0] sm:$0xff] }
  0x80   :  { %168 = vperm.xlu1 %932, %v1190_v2   ;;  %v1308_v22 = vpack.c.bf16 %v351_v18, %v348_v15  ;;  %827 = vmatpush3.bf16.msra.mxu1 %v1312_v24 }
  0x81   :  { %943 = vset.pattern.permute.xlu0 %v1081_v0  ;;  %828 = vmatprep.subr.bf16.mxu1 %v1095_v21 }
  0x82   :  { %238 = vperm.xlu0 %943, %v1228_v16  }
  0x84   :  { %172 = vperm.xlu1 %932, %v1188_v1   ;;  %830 = vmatpush3.bf16.msra.mxu1 %v1322_v38 }
  0x85   :  { %831 = vmatprep.subr.bf16.mxu1 %v1095_v21 }
  0x86   :  { %946 = vset.pattern.permute.xlu0 %v1082_v3 }
  0x87   :  { %253 = vperm.xlu0 %946, %v1237_v17  }
  0x88   :  { %934 = vset.pattern.permute.xlu1 %v1090_v11  ;;  %v349_v11 = vld [vmem:[#allocation8 + $0xf8] sm:$0xff] }
  0x89   :  { %182 = vperm.xlu1 %934, %v1188_v1  }
  0x8b   :  { %948 = vset.pattern.permute.xlu0 %v1084_v5 }
  0x8c   :  { %269 = vperm.xlu0 %948, %v1228_v16  }
  0x8d   :  { %935 = vset.pattern.permute.xlu1 %v1091_v12  ;;  %v352_v12 = vld [vmem:[#allocation8 + $0x110] sm:$0xff] }
  0x8e   :  { %188 = vperm.xlu1 %935, %v1190_v2  }
  0x90   :  { %951 = vset.pattern.permute.xlu0 %v1085_v6 }
  0x91   :  { %283 = vperm.xlu0 %951, %v1237_v17  }
  0x92   :  { %937 = vset.pattern.permute.xlu1 %v1096_v37  ;;  %v1097_v37 = vmov 15  }
  0x93   :  { %198 = vperm.xlu1 %937, %v1190_v2  }
  0x95   :  { %953 = vset.pattern.permute.xlu0 %v1089_v10 }
  0x96   :  { %299 = vperm.xlu0 %953, %v1228_v16  }
  0x97   :  { %202 = vperm.xlu1 %937, %v1188_v1  }
  0x9a   :  { %956 = vset.pattern.permute.xlu0 %v1087_v8 }
  0x9b   :  { %939 = vset.pattern.permute.xlu1 %v1092_v13  ;;  %313 = vperm.xlu0 %956, %v1237_v17   ;;  %v1304_v13 = vpack.c.bf16 %v352_v12, %v349_v11 }
  0x9c   :  { %212 = vperm.xlu1 %939, %v1188_v1  }
  0x9d   :  { %799 = vmatprep.subr.bf16.mxu0 %v1304_v13 }
  0x9e   :  { %801 = vmatpush1.bf16.msra.mxu0 %v1308_v22 }
  0x9f   :  { %803 = vmatprep.subr.bf16.mxu0 %v1316_v29 }
  0xa0   :  { %940 = vset.pattern.permute.xlu1 %v1093_v14  ;;  %v354_v14 = vld [vmem:[#allocation8 + $0x120] sm:$0xff] }
  0xa1   :  { %218 = vperm.xlu1 %940, %v1190_v2   ;;  %v1319_v33 = vpack.c.bf16 %v357_v31, %v354_v14 }
  0xa3   :  { %805 = vmatpush1.bf16.msra.mxu0 %v1319_v33 }
  0xa4   :  { %807 = vmatprep.subr.bf16.mxu0 %v1327_v42 }
  0xa5   :  { %942 = vset.pattern.permute.xlu1 %v1097_v37 }
  0xa6   :  { %228 = vperm.xlu1 %942, %v1190_v2   ;;  %v1334_v2 = vpack.c.bf16 %v365_v50, %v362_v47 }
  0xa7   :  { %809 = vmatpush1.bf16.msra.mxu0 %v1330_v48 }
  0xa8   :  { %833 = vmatpush3.bf16.msra.mxu1 %v1334_v2  ;;  %835 = vmatprep.subr.bf16.mxu0 %v1243_v20 }
  0xa9   :  { %866 = vmatprep.subr.bf16.mxu1 %v1095_v21 }
  0xaa   :  { %232 = vperm.xlu1 %942, %v1188_v1  }
  0xae   :  { %944 = vset.pattern.permute.xlu1 %v1082_v3 }
  0xaf   :  { %249 = vperm.xlu1 %944, %v1228_v16  }
  0xb3   :  { %945 = vset.pattern.permute.xlu1 %v1081_v0 }
  0xb4   :  { %243 = vperm.xlu1 %945, %v1237_v17  }
  0xb8   :  { %947 = vset.pattern.permute.xlu1 %v1083_v4 }
  0xb9   :  { %259 = vperm.xlu1 %947, %v1228_v16  }
  0xbd   :  { %263 = vperm.xlu1 %947, %v1237_v17  }
  0xc1   :  { %949 = vset.pattern.permute.xlu1 %v1084_v5 }
  0xc2   :  { %273 = vperm.xlu1 %949, %v1237_v17  }
  0xc6   :  { %950 = vset.pattern.permute.xlu1 %v1085_v6 }
  0xc7   :  { %279 = vperm.xlu1 %950, %v1228_v16  }
  0xca   :  { %v83_v1 = vpop.permute.xlu1 %82  ;;  %v78_v56 = vpop.permute.xlu0 %77 }
  0xcb   :  { %952 = vset.pattern.permute.xlu1 %v1086_v7 }
  0xcc   :  { %289 = vperm.xlu1 %952, %v1228_v16  }
  0xcf   :  { %v93_v0 = vpop.permute.xlu1 %92  ;;  %v89_v59 = vpop.permute.xlu0 %88 }
  0xd0   :  { %293 = vperm.xlu1 %952, %v1237_v17  }
  0xd4   :  { %954 = vset.pattern.permute.xlu1 %v1089_v10  ;;  %v99_v3 = vpop.permute.xlu1 %98  ;;  %v103_v61 = vpop.permute.xlu0 %102  ;;  %v70_v10 = vlaneseq }
  0xd5   :  { %303 = vperm.xlu1 %954, %v1237_v17  }
  0xd6   :  { %v1362_v17 = vand.u32 127, %v70_v10 }
  0xd8   :  { %vm90_vm1 = vcmp.eq.s32.totalorder %v89_v59, %v1362_v17  ;;  %vm79_vm2 = vcmp.eq.s32.totalorder %v78_v56, %v1362_v17  ;;  %vm100_vm3 = vcmp.eq.s32.totalorder %v99_v3, %v1362_v17 }
  0xd9   :  { %955 = vset.pattern.permute.xlu1 %v1087_v8  ;;  %v109_v4 = vpop.permute.xlu1 %108  ;;  %v119_v11 = vpop.permute.xlu0 %118  ;;  %v95_v12 = vsel %vm90_vm1, %v93_v0, 0.0  ;;  %v85_v18 = vsel %vm79_vm2, %v83_v1, 0.0  ;;  %v105_v19 = vsel %vm100_vm3, %v103_v61, 0.0 }
  0xda   :  { %309 = vperm.xlu1 %955, %v1228_v16   ;;  %v96_v26 = vadd.f32 %v95_v12, %v85_v18  ;;  %vm110_vm4 = vcmp.eq.s32.totalorder %v109_v4, %v1362_v17  ;;  %vm120_vm5 = vcmp.eq.s32.totalorder %v119_v11, %v1362_v17 }
  0xdc   :  { %v106_v14 = vadd.f32 %v105_v19, %v96_v26 }
  0xdd   :  { %v113_v5 = vpop.permute.xlu1 %112 }
  0xde   :  { %v133_v16 = vpop.permute.xlu0 %132  ;;  %v115_v28 = vsel %vm110_vm4, %v113_v5, 0.0 }
  0xdf   :  { %v116_v37 = vadd.f32 %v115_v28, %v106_v14 }
  0xe2   :  { %v123_v6 = vpop.permute.xlu1 %122 }
  0xe3   :  { %v149_v23 = vpop.permute.xlu0 %148  ;;  %v125_v31 = vsel %vm120_vm5, %v123_v6, 0.0 }
  0xe4   :  { %v126_v41 = vadd.f32 %v125_v31, %v116_v37  ;;  %vm150_vm8 = vcmp.eq.s32.totalorder %v149_v23, %v1362_v17 }
  0xe7   :  { %v129_v20 = vpop.permute.xlu1 %128 }
  0xe8   :  { %vm130_vm6 = vcmp.eq.s32.totalorder %v129_v20, %v1362_v17  ;;  %v163_v32 = vpop.permute.xlu0 %162 }
  0xe9   :  { %v135_v39 = vsel %vm130_vm6, %v133_v16, 0.0 }
  0xea   :  { %v136_v50 = vadd.f32 %v135_v39, %v126_v41 }
  0xec   :  { %v139_v52 = vpop.permute.xlu1 %138 }
  0xed   :  { %vm140_vm7 = vcmp.eq.s32.totalorder %v139_v52, %v1362_v17  ;;  %v179_v45 = vpop.permute.xlu0 %178 }
  0xee   :  { %vm180_vm11 = vcmp.eq.s32.totalorder %v179_v45, %v1362_v17 }
  0xf0   :  { %v143_v7 = vpop.permute.xlu1 %142 }
  0xf1   :  { %v145_v43 = vsel %vm140_vm7, %v143_v7, 0.0 }
  0xf2   :  { %v146_v0 = vadd.f32 %v145_v43, %v136_v50  ;;  %v193_v4 = vpop.permute.xlu0 %192 }
  0xf5   :  { %v153_v54 = vpop.permute.xlu1 %152 }
  0xf6   :  { %v155_v1 = vsel %vm150_vm8, %v153_v54, 0.0 }
  0xf7   :  { %v156_v5 = vadd.f32 %v155_v1, %v146_v0  ;;  %v209_v56 = vpop.permute.xlu0 %208 }
  0xf8   :  { %vm210_vm14 = vcmp.eq.s32.totalorder %v209_v56, %v1362_v17 }
  0xfa   :  { %v159_v57 = vpop.permute.xlu1 %158 }
  0xfb   :  { %vm160_vm9 = vcmp.eq.s32.totalorder %v159_v57, %v1362_v17 }
  0xfc   :  { %v165_v3 = vsel %vm160_vm9, %v163_v32, 0.0 }
  0xfd   :  { %v166_v52 = vadd.f32 %v165_v3, %v156_v5 }
  0xff   :  { %v169_v60 = vpop.permute.xlu1 %168 }
 0x100   :  { %vm170_vm10 = vcmp.eq.s32.totalorder %v169_v60, %v1362_v17  ;;  %v223_v60 = vpop.permute.xlu0 %222 }
 0x103   :  { %v173_v63 = vpop.permute.xlu1 %172 }
 0x104   :  { %v175_v20 = vsel %vm170_vm10, %v173_v63, 0.0 }
 0x105   :  { %v176_v59 = vadd.f32 %v175_v20, %v166_v52 }
 0x108   :  { %v183_v8 = vpop.permute.xlu1 %182 }
 0x109   :  { %v185_v7 = vsel %vm180_vm11, %v183_v8, 0.0 }
 0x10a   :  { %v186_v57 = vadd.f32 %v185_v7, %v176_v59 }
 0x10d   :  { %v189_v15 = vpop.permute.xlu1 %188 }
 0x10e   :  { %vm190_vm12 = vcmp.eq.s32.totalorder %v189_v15, %v1362_v17 }
 0x10f   :  { %v195_v61 = vsel %vm190_vm12, %v193_v4, 0.0 }
 0x110   :  { %v196_v11 = vadd.f32 %v195_v61, %v186_v57 }
 0x112   :  { %v199_v35 = vpop.permute.xlu1 %198 }
 0x113   :  { %vm200_vm13 = vcmp.eq.s32.totalorder %v199_v35, %v1362_v17 }
 0x116   :  { %v203_v47 = vpop.permute.xlu1 %202 }
 0x117   :  { %v205_v54 = vsel %vm200_vm13, %v203_v47, 0.0 }
 0x118   :  { %v206_v63 = vadd.f32 %v205_v54, %v196_v11 }
 0x11b   :  { %v213_v6 = vpop.permute.xlu1 %212 }
 0x11c   :  { %v215_v16 = vsel %vm210_vm14, %v213_v6, 0.0 }
 0x11d   :  { %v216_v15 = vadd.f32 %v215_v16, %v206_v63 }
 0x120   :  { %v219_v10 = vpop.permute.xlu1 %218 }
 0x121   :  { %vm220_vm15 = vcmp.eq.s32.totalorder %v219_v10, %v1362_v17 }
 0x122   :  { %v225_v18 = vsel %vm220_vm15, %v223_v60, 0.0 }
 0x123   :  { %v226_v8 = vadd.f32 %v225_v18, %v216_v15 }
 0x125   :  { %v229_v12 = vpop.permute.xlu1 %228 }
 0x126   :  { %vm230_vm1 = vcmp.eq.s32.totalorder %v229_v12, %v1362_v17 }
 0x129   :  { %v233_v19 = vpop.permute.xlu1 %232 }
 0x12a   :  { %v235_v23 = vsel %vm230_vm1, %v233_v19, 0.0 }
 0x12b   :  { %v236_v26 = vadd.f32 %v235_v23, %v226_v8 }
 0x12d   :  { %431 = vmatmul.mubr.f32.vlgmr.msra.gmra.mrb[0].mxu0 %v236_v26  ;;  %741 = vmatmul.mubr.f32.vlgmr.msra.gmra.mrb[0].mxu1 %v236_v26 }
 0x12e   :  { %v250_v28 = vpop.permute.xlu1 %249  ;;  %837 = vmatpush1.bf16.msra.mxu0 %v1247_v25  ;;  %868 = vmatpush3.bf16.msra.mxu1 %v1250_v27 }
 0x12f   :  { %839 = vmatprep.subr.bf16.mxu0 %v1255_v30  ;;  %869 = vmatprep.subr.bf16.mxu1 %v1095_v21  ;;  %v239_v30 = vpop.permute.xlu0 %238  ;;  %vm251_vm2 = vcmp.eq.s32.totalorder %v250_v28, %v1362_v17 }
 0x130   :  { %571 = vmatprep.mubr.f32.mxu0 %v1098_v51  ;;  %775 = vmatprep.mubr.msk.f32.mxu1 %vm1099_vm0, %v1098_v51  ;;  %vm240_vm0 = vcmp.eq.s32.totalorder %v239_v30, %v1362_v17 }
 0x132   :  { %841 = vmatpush1.bf16.msra.mxu0 %v1259_v34  ;;  %871 = vmatpush3.bf16.msra.mxu1 %v1263_v36 }
 0x133   :  { %v244_v14 = vpop.permute.xlu1 %243  ;;  %843 = vmatprep.subr.bf16.mxu0 %v1268_v40  ;;  %872 = vmatprep.subr.bf16.mxu1 %v1095_v21  ;;  %v254_v36 = vpop.permute.xlu0 %253 }
 0x136   :  { %845 = vmatpush1.bf16.msra.mxu0 %v1271_v44  ;;  %874 = vmatpush3.bf16.msra.mxu1 %v1275_v46 }
 0x137   :  { %847 = vmatprep.subr.bf16.mxu0 %v1281_v49  ;;  %875 = vmatprep.subr.bf16.mxu1 %v1095_v21  ;;  %v270_v44 = vpop.permute.xlu0 %269  ;;  %v246_v49 = vsel %vm240_vm0, %v244_v14, 0.0 }
 0x138   :  { %v260_v25 = vpop.permute.xlu1 %259  ;;  %vm271_vm4 = vcmp.eq.s32.totalorder %v270_v44, %v1362_v17 }
 0x139   :  { %vm261_vm3 = vcmp.eq.s32.totalorder %v260_v25, %v1362_v17 }
 0x13a   :  { %849 = vmatpush1.bf16.msra.mxu0 %v1284_v53  ;;  %877 = vmatpush3.bf16.msra.mxu1 %v1287_v55  ;;  %v256_v55 = vsel %vm251_vm2, %v254_v36, 0.0 }
 0x13b   :  { %851 = vmatprep.subr.bf16.mxu0 %v1293_v58  ;;  %878 = vmatprep.subr.bf16.mxu1 %v1095_v21  ;;  %v284_v53 = vpop.permute.xlu0 %283 }
 0x13c   :  { %v264_v27 = vpop.permute.xlu1 %263 }
 0x13d   :  { %v266_v58 = vsel %vm261_vm3, %v264_v27, 0.0 }
 0x13e   :  { %853 = vmatpush1.bf16.msra.mxu0 %v1297_v62  ;;  %880 = vmatpush3.bf16.msra.mxu1 %v1301_v9 }
 0x13f   :  { %855 = vmatprep.subr.bf16.mxu0 %v1304_v13  ;;  %881 = vmatprep.subr.bf16.mxu1 %v1095_v21  ;;  %v300_v13 = vpop.permute.xlu0 %299 }
 0x140   :  { %vm301_vm7 = vcmp.eq.s32.totalorder %v300_v13, %v1362_v17 }
 0x141   :  { %v274_v34 = vpop.permute.xlu1 %273 }
 0x142   :  { %857 = vmatpush1.bf16.msra.mxu0 %v1308_v22  ;;  %883 = vmatpush3.bf16.msra.mxu1 %v1312_v24  ;;  %v276_v9 = vsel %vm271_vm4, %v274_v34, 0.0 }
 0x143   :  { %859 = vmatprep.subr.bf16.mxu0 %v1316_v29  ;;  %884 = vmatprep.subr.bf16.mxu1 %v1095_v21  ;;  %v314_v51 = vpop.permute.xlu0 %313 }
 0x146   :  { %v280_v40 = vpop.permute.xlu1 %279  ;;  %861 = vmatpush1.bf16.msra.mxu0 %v1319_v33  ;;  %886 = vmatpush3.bf16.msra.mxu1 %v1322_v38 }
 0x147   :  { %863 = vmatprep.subr.bf16.mxu0 %v1327_v42  ;;  %887 = vmatprep.subr.bf16.mxu1 %v1095_v21  ;;  %v257_v21 = vadd.f32 %v256_v55, %v246_v49  ;;  %vm281_vm5 = vcmp.eq.s32.totalorder %v280_v40, %v1362_v17 }
 0x148   :  { %v286_v24 = vsel %vm281_vm5, %v284_v53, 0.0 }
 0x149   :  { %v267_v22 = vadd.f32 %v266_v58, %v257_v21 }
 0x14a   :  { %865 = vmatpush1.bf16.msra.mxu0 %v1330_v48  ;;  %889 = vmatpush3.bf16.msra.mxu1 %v1334_v2 }
 0x14b   :  { %v290_v46 = vpop.permute.xlu1 %289  ;;  %v277_v29 = vadd.f32 %v276_v9, %v267_v22 }
 0x14c   :  { %vm291_vm6 = vcmp.eq.s32.totalorder %v290_v46, %v1362_v17 }
 0x14d   :  { %v287_v42 = vadd.f32 %v286_v24, %v277_v29 }
 0x14f   :  { %v294_v62 = vpop.permute.xlu1 %293 }
 0x150   :  { %v296_v38 = vsel %vm291_vm6, %v294_v62, 0.0 }
 0x151   :  { %v297_v2 = vadd.f32 %v296_v38, %v287_v42 }
 0x154   :  { %v304_v33 = vpop.permute.xlu1 %303 }
 0x155   :  { %v306_v48 = vsel %vm301_vm7, %v304_v33, 0.0 }
 0x156   :  { %v307_v32 = vadd.f32 %v306_v48, %v297_v2 }
 0x159   :  { %v310_v31 = vpop.permute.xlu1 %309 }
 0x15a   :  { %vm311_vm8 = vcmp.eq.s32.totalorder %v310_v31, %v1362_v17 }
 0x15b   :  { %v316_v35 = vsel %vm311_vm8, %v314_v51, 0.0 }
 0x15c   :  { %v317_v37 = vadd.f32 %v316_v35, %v307_v32 }
 0x15e   :  { %572 = vmatmul.mubr.f32.vlgmr.msra.gmra.mrb[2].mxu0 %v317_v37  ;;  %776 = vmatmul.mubr.f32.vlgmr.msra.gmra.mrb[2].mxu1 %v317_v37 }
 0x200   :  { %v432_v39 = vpop.f32.mrb[0].mxu0  ;;  %v503_v41 = vpop.f32.mrb[0].mxu1 }
 0x201   :  { %v434_v43 = vpop.f32.mrb[1].mxu0  ;;  %v742_v45 = vpop.f32.mrb[1].mxu1  ;;  %v648_v47 = vand.u32 2147483647, %v432_v39  ;;  %v650_v50 = vand.u32 2147483647, %v503_v41 }
 0x202   :  { %v649_v1 = vand.u32 2147483647, %v434_v43 }
 0x231   :  { %v573_v0 = vpop.f32.mrb[2].mxu0  ;;  %v644_v3 = vpop.f32.mrb[2].mxu1 }
 0x232   :  { %v651_v4 = vadd.f32 %v648_v47, %v573_v0  ;;  %v653_v5 = vadd.f32 %v650_v50, %v644_v3  ;;  %v575_v6 = vpop.f32.mrb[3].mxu0  ;;  %v777_v20 = vpop.f32.mrb[3].mxu1 }
 0x233   :  { %v652_v17 = vadd.f32 %v649_v1, %v575_v6 }
 0x234   :  { %654 = vst [vmem:[#allocation10] sm:$0xff] %v651_v4  ;;  %656 = vst [vmem:[#allocation10 + $0x10] sm:$0xff] %v653_v5 }
 0x235   :  { %655 = vst [vmem:[#allocation10 + $0x8] sm:$0xff] %v652_v17 }
 0x236   :  { %1056 = shalt.err (!%p1053_p8)
}
 0x237   :  { %s1057_s19 = scalar_lea.hbm %s1438_s5, 384 }
 0x238   :  { %p1058_p9 = scmp.ne.s32.totalorder %s1438_s5, %s1057_s19  ;;  %p1061_p10 = scmp.lt.u32.totalorder %s1057_s19, %s1438_s5 }
 0x23a   :  { %p1063_p11 = pnand %p1061_p10, %p1058_p9 }
 0x23c   :  { %1066 = shalt.err (!%p1063_p11)
}
 0x23d   :  { %666 = dma.vmem_to_hbm [thread:$0]  %s664_s15, 384, %s1438_s5, [#allocation4]  }
 0x23e   :  { %1073 = dma.done.wait [#allocation4], 384  }
 0x23f   :  { %1074 = vsyncadd [#allocation4], 4294966912 }
 0x240   :  { %670 = vsyncpa [#allocation3], 1 }
 0x241   :  { %671 = vsyncpa [#allocation6], 1 }
 0x242   :  { %672 = vsyncpa [#allocation9], 1 }
 0x243   :  { %673 = vsyncpa [#allocation4], 1 }

</bundles_post_ra>
